<compile_context>
chip_gen: v5e
topology: v5e:2x2
jax: 0.10.0
libtpu: 0.0.40
codegen_flags: <defaults>
</compile_context>

<pallas_src>
import math

import jax
import jax.numpy as jnp
from jax.experimental import pallas as pl
from jax.experimental.pallas import tpu as pltpu

_DEG2RAD = math.pi / 180.0
_HALF_PI = math.pi / 2.0


def _round_up(x, m):
    return ((x + m - 1) // m) * m


def _cdiv(a, b):
    return -(-a // b)


def _make_gd_loss_kernel(batch, tr):
    """Kernel over one (2, TR, 128) tile; writes an (8, 128) masked partial sum."""
    nsub = tr // 8  # tr is always a multiple of 8

    def kernel(pred_ref, true_ref, out_ref):
        i = pl.program_id(0)

        # Per-channel scaling with deg2rad folded in, as scalar immediates:
        #   lat: (x*25 + 15) deg -> radians ; lng: (x*360) deg -> radians
        lat_scale = 25.0 * _DEG2RAD
        lat_off = 15.0 * _DEG2RAD
        lng_scale = 360.0 * _DEG2RAD

        # _range(): only the *predicted* latitude is clamped to [-90, 90] deg
        # (clamping in radians after folding deg2rad is identical).
        lat1 = jnp.clip(pred_ref[0] * lat_scale + lat_off, -_HALF_PI, _HALF_PI)
        lng1 = pred_ref[1] * lng_scale
        lat2 = true_ref[0] * lat_scale + lat_off
        lng2 = true_ref[1] * lng_scale

        sin_lat1, cos_lat1 = jnp.sin(lat1), jnp.cos(lat1)
        sin_lat2, cos_lat2 = jnp.sin(lat2), jnp.cos(lat2)

        dlng = lng2 - lng1
        cos_dlng, sin_dlng = jnp.cos(dlng), jnp.sin(dlng)

        y = jnp.sqrt((cos_lat2 * sin_dlng) ** 2 +
                     (cos_lat1 * sin_lat2 - sin_lat1 * cos_lat2 * cos_dlng) ** 2)
        x = sin_lat1 * sin_lat2 + cos_lat1 * cos_lat2 * cos_dlng
        d = jnp.arctan2(y, x)                         # (TR, 128) angular distance (rad)

        # Mask padded tail elements (global batch index >= batch) AFTER the
        # transcendentals so any garbage/NaN in padded lanes is zeroed out.
        row = jax.lax.broadcasted_iota(jnp.int32, d.shape, 0)
        lane = jax.lax.broadcasted_iota(jnp.int32, d.shape, 1)
        gidx = (i * tr + row) * 128 + lane
        d = jnp.where(gidx < batch, d, 0.0)

        # Fold the TR rows down to an (8, 128) lane-dense partial sum (pure
        # VPU adds across row-blocks; full cross-lane reduce stays in wrapper).
        out_ref[...] = jnp.sum(d.reshape(nsub, 8, 128), axis=0)

    return kernel


def gd_loss(pred, true, *, max_tr=2048):
    """Pallas equivalent of GDLoss.forward(pred, true, device). Returns shape (1,)."""
    assert pred.shape == true.shape and pred.ndim == 2 and pred.shape[1] >= 2
    b = pred.shape[0]

    # Only the lat/lng channels are used; channels -> leading dim, batch dense.
    p = jnp.transpose(pred[:, :2].astype(jnp.float32))   # (2, B)
    t = jnp.transpose(true[:, :2].astype(jnp.float32))   # (2, B)

    # Batch laid out as rows x 128 lanes; rows tiled TR at a time.
    rows = _cdiv(b, 128)
    g = _cdiv(rows, max_tr)
    # v7x megacore: keep at least 2 parallel blocks when there is enough work.
    if g == 1 and rows >= 16:
        g = 2
    tr = _round_up(_cdiv(rows, g), 8)                     # multiple of 8 sublanes
    rows_p = g * tr
    bp = rows_p * 128
    if bp != b:
        p = jnp.pad(p, ((0, 0), (0, bp - b)))
        t = jnp.pad(t, ((0, 0), (0, bp - b)))
    p = p.reshape(2, rows_p, 128)
    t = t.reshape(2, rows_p, 128)

    partial = pl.pallas_call(
        _make_gd_loss_kernel(b, tr),
        out_shape=jax.ShapeDtypeStruct((8 * g, 128), jnp.float32),
        grid=(g,),
        in_specs=[
            pl.BlockSpec((2, tr, 128), lambda i: (0, i, 0)),
            pl.BlockSpec((2, tr, 128), lambda i: (0, i, 0)),
        ],
        out_specs=pl.BlockSpec((8, 128), lambda i: (i, 0)),
        compiler_params=pltpu.CompilerParams(
            dimension_semantics=("parallel",)),
    )(p, t)

    # Combine the lane-dense partial sums and divide by the GLOBAL batch size.
    return (jnp.sum(partial) / b).reshape(1)


def _gd_loss_ref(pred, true):
    """Pure-JAX reference mirroring the PyTorch math (degrees, then radians)."""
    lat1 = jnp.deg2rad(jnp.clip(pred[:, 0] * 25.0 + 15.0, -90.0, 90.0))
    lng1 = jnp.deg2rad(pred[:, 1] * 360.0)
    lat2 = jnp.deg2rad(true[:, 0] * 25.0 + 15.0)
    lng2 = jnp.deg2rad(true[:, 1] * 360.0)
    dlng = lng2 - lng1
    y = jnp.sqrt((jnp.cos(lat2) * jnp.sin(dlng)) ** 2 +
                 (jnp.cos(lat1) * jnp.sin(lat2)
                  - jnp.sin(lat1) * jnp.cos(lat2) * jnp.cos(dlng)) ** 2)
    x = jnp.sin(lat1) * jnp.sin(lat2) + jnp.cos(lat1) * jnp.cos(lat2) * jnp.cos(dlng)
    return (jnp.sum(jnp.arctan2(y, x)) / pred.shape[0]).reshape(1)


if __name__ == "__main__":
    key = jax.random.PRNGKey(0)
    k1, k2, k3, k4 = jax.random.split(key, 4)

    # Small case matching the module's typical (B, 2) inputs.
    B, M = 8, 2
    pred = jax.random.uniform(k1, (B, M), jnp.float32, minval=-1.0, maxval=1.0)
    true = jax.random.uniform(k2, (B, M), jnp.float32, minval=-1.0, maxval=1.0)

    out = jax.block_until_ready(gd_loss(pred, true))
    ref = jax.block_until_ready(_gd_loss_ref(pred, true))
    assert out.shape == (1,)
    assert jnp.allclose(out, ref, atol=2e-3, rtol=2e-3), (out, ref)

    # Multi-tile path: forces grid > 1, exercises tail masking and the
    # predicted-latitude clamp (inputs wide enough to exceed +/-90 deg).
    B2 = 200
    pred2 = jax.random.uniform(k3, (B2, M), jnp.float32, minval=-6.0, maxval=6.0)
    true2 = jax.random.uniform(k4, (B2, M), jnp.float32, minval=-1.0, maxval=1.0)

    out2 = jax.block_until_ready(gd_loss(pred2, true2, max_tr=1))
    ref2 = jax.block_until_ready(_gd_loss_ref(pred2, true2))
    assert out2.shape == (1,)
    assert jnp.allclose(out2, ref2, atol=2e-3, rtol=2e-3), (out2, ref2)

    print("KERNEL_OK")
</pallas_src>

<mosaic_0001>
module attributes {stable_mosaic.version = 11 : i64} {
  func.func @kernel(%arg0: i32, %arg1: memref<2x8x128xf32, #tpu.memory_space<vmem>>, %arg2: memref<2x8x128xf32, #tpu.memory_space<vmem>>, %arg3: memref<8x128xf32, #tpu.memory_space<vmem>>) attributes {dimension_semantics = [#tpu.dimension_semantics<parallel>], iteration_bounds = array<i64: 1>, scalar_prefetch = 0 : i64, scratch_operands = 0 : i64, tpu.core_type = #tpu.core_type<tc>, window_params = [{transform_indices = @transform_0, window_bounds = array<i64: 2, 8, 128>}, {transform_indices = @transform_1, window_bounds = array<i64: 2, 8, 128>}, {transform_indices = @transform_2, window_bounds = array<i64: 8, 128>}]} {
    %c0 = arith.constant 0 : index
    %c0_0 = arith.constant 0 : index
    %c0_1 = arith.constant 0 : index
    %0 = vector.load %arg1[%c0, %c0_0, %c0_1] : memref<2x8x128xf32, #tpu.memory_space<vmem>>, vector<1x8x128xf32>
    %1 = vector.shape_cast %0 : vector<1x8x128xf32> to vector<8x128xf32>
    %cst = arith.constant 0.436332315 : f32
    %2 = vector.broadcast %cst : f32 to vector<8x128xf32>
    %3 = arith.mulf %1, %2 : vector<8x128xf32>
    %cst_2 = arith.constant 0.261799395 : f32
    %4 = vector.broadcast %cst_2 : f32 to vector<8x128xf32>
    %5 = arith.addf %3, %4 : vector<8x128xf32>
    %cst_3 = arith.constant -1.57079637 : f32
    %cst_4 = arith.constant 1.57079637 : f32
    %6 = vector.broadcast %cst_3 : f32 to vector<8x128xf32>
    %7 = arith.maximumf %6, %5 : vector<8x128xf32>
    %8 = vector.broadcast %cst_4 : f32 to vector<8x128xf32>
    %9 = arith.minimumf %8, %7 : vector<8x128xf32>
    %c1 = arith.constant 1 : index
    %c0_5 = arith.constant 0 : index
    %c0_6 = arith.constant 0 : index
    %10 = vector.load %arg1[%c1, %c0_5, %c0_6] : memref<2x8x128xf32, #tpu.memory_space<vmem>>, vector<1x8x128xf32>
    %11 = vector.shape_cast %10 : vector<1x8x128xf32> to vector<8x128xf32>
    %cst_7 = arith.constant 6.28318548 : f32
    %12 = vector.broadcast %cst_7 : f32 to vector<8x128xf32>
    %13 = arith.mulf %11, %12 : vector<8x128xf32>
    %c0_8 = arith.constant 0 : index
    %c0_9 = arith.constant 0 : index
    %c0_10 = arith.constant 0 : index
    %14 = vector.load %arg2[%c0_8, %c0_9, %c0_10] : memref<2x8x128xf32, #tpu.memory_space<vmem>>, vector<1x8x128xf32>
    %15 = vector.shape_cast %14 : vector<1x8x128xf32> to vector<8x128xf32>
    %cst_11 = arith.constant 0.436332315 : f32
    %16 = vector.broadcast %cst_11 : f32 to vector<8x128xf32>
    %17 = arith.mulf %15, %16 : vector<8x128xf32>
    %cst_12 = arith.constant 0.261799395 : f32
    %18 = vector.broadcast %cst_12 : f32 to vector<8x128xf32>
    %19 = arith.addf %17, %18 : vector<8x128xf32>
    %c1_13 = arith.constant 1 : index
    %c0_14 = arith.constant 0 : index
    %c0_15 = arith.constant 0 : index
    %20 = vector.load %arg2[%c1_13, %c0_14, %c0_15] : memref<2x8x128xf32, #tpu.memory_space<vmem>>, vector<1x8x128xf32>
    %21 = vector.shape_cast %20 : vector<1x8x128xf32> to vector<8x128xf32>
    %cst_16 = arith.constant 6.28318548 : f32
    %22 = vector.broadcast %cst_16 : f32 to vector<8x128xf32>
    %23 = arith.mulf %21, %22 : vector<8x128xf32>
    %24 = math.sin %9 : vector<8x128xf32>
    %25 = math.cos %9 : vector<8x128xf32>
    %26 = math.sin %19 : vector<8x128xf32>
    %27 = math.cos %19 : vector<8x128xf32>
    %28 = arith.subf %23, %13 : vector<8x128xf32>
    %29 = math.cos %28 : vector<8x128xf32>
    %30 = math.sin %28 : vector<8x128xf32>
    %31 = arith.mulf %27, %30 : vector<8x128xf32>
    %32 = arith.mulf %31, %31 : vector<8x128xf32>
    %33 = arith.mulf %25, %26 : vector<8x128xf32>
    %34 = arith.mulf %24, %27 : vector<8x128xf32>
    %35 = arith.mulf %34, %29 : vector<8x128xf32>
    %36 = arith.subf %33, %35 : vector<8x128xf32>
    %37 = arith.mulf %36, %36 : vector<8x128xf32>
    %38 = arith.addf %32, %37 : vector<8x128xf32>
    %39 = math.sqrt %38 : vector<8x128xf32>
    %40 = arith.mulf %24, %26 : vector<8x128xf32>
    %41 = arith.mulf %25, %27 : vector<8x128xf32>
    %42 = arith.mulf %41, %29 : vector<8x128xf32>
    %43 = arith.addf %40, %42 : vector<8x128xf32>
    %44 = math.atan2 %39, %43 : vector<8x128xf32>
    %45 = tpu.iota {dimensions = array<i32: 0>} : vector<8x128xi32>
    %46 = tpu.iota {dimensions = array<i32: 1>} : vector<8x128xi32>
    %c8_i32 = arith.constant 8 : i32
    %47 = arith.muli %arg0, %c8_i32 : i32
    %48 = vector.broadcast %47 : i32 to vector<8x128xi32>
    %49 = arith.addi %48, %45 : vector<8x128xi32>
    %c128_i32 = arith.constant 128 : i32
    %50 = vector.broadcast %c128_i32 : i32 to vector<8x128xi32>
    %51 = arith.muli %49, %50 : vector<8x128xi32>
    %52 = arith.addi %51, %46 : vector<8x128xi32>
    %c8_i32_17 = arith.constant 8 : i32
    %53 = vector.broadcast %c8_i32_17 : i32 to vector<8x128xi32>
    %54 = arith.cmpi slt, %52, %53 : vector<8x128xi32>
    %cst_18 = arith.constant 0.000000e+00 : f32
    %55 = vector.broadcast %cst_18 : f32 to vector<8x128xf32>
    %56 = arith.select %54, %44, %55 : vector<8x128xi1>, vector<8x128xf32>
    %57 = vector.shape_cast %56 : vector<8x128xf32> to vector<1x8x128xf32>
    %cst_19 = arith.constant dense<0.000000e+00> : vector<8x128xf32>
    %58 = vector.multi_reduction <add>, %57, %cst_19 [0] : vector<1x8x128xf32> to vector<8x128xf32>
    %c0_20 = arith.constant 0 : index
    %c0_21 = arith.constant 0 : index
    %59 = vector.load %arg3[%c0_20, %c0_21] : memref<8x128xf32, #tpu.memory_space<vmem>>, vector<8x128xf32>
    tpu.vector_store %arg3[%c0_20, %c0_21], %58 {strides = array<i32>} : memref<8x128xf32, #tpu.memory_space<vmem>>, vector<8x128xf32>,
    return
  }
  func.func @transform_0(%arg0: i32) -> (i32, i32, i32) {
    %c0_i32 = arith.constant 0 : i32
    %c0_i32_0 = arith.constant 0 : i32
    %c0_i32_1 = arith.constant 0 : i32
    return %c0_i32, %arg0, %c0_i32_0 : i32, i32, i32
  }
  func.func @transform_1(%arg0: i32) -> (i32, i32, i32) {
    %c0_i32 = arith.constant 0 : i32
    %c0_i32_0 = arith.constant 0 : i32
    %c0_i32_1 = arith.constant 0 : i32
    return %c0_i32, %arg0, %c0_i32_0 : i32, i32, i32
  }
  func.func @transform_2(%arg0: i32) -> (i32, i32) {
    %c0_i32 = arith.constant 0 : i32
    %c0_i32_0 = arith.constant 0 : i32
    return %arg0, %c0_i32 : i32, i32
  }
}

</mosaic_0001>

<bundles_post_ra>
// kernel: tpu_custom_call.1
= control target key start
LH: loop header
LB: loop body
LE: loop exit
PB: predicated region body
PF: predicated region fallthrough
CT: control target
= control target key end

     0   :  { %7 = vsyncpa [#allocation3], 0  ;;  %s1625_s0 = inlined_call_operand.hbm [shape: f32[2,8,128], index: 0, kind: input, shape index: {}]   ;;  %s1626_s1 = inlined_call_operand.hbm [shape: f32[2,8,128], index: 1, kind: input, shape index: {}]   ;;  %s1627_s2 = inlined_call_operand.hbm [shape: f32[8,128], index: 2, kind: output, shape index: {}]  }
   0x1   :  { %8 = vsyncpa [#allocation6], 0 }
   0x2   :  { %9 = vsyncpa [#allocation4], 0  ;;  %s14_s11 = sshll.u32 %s1625_s0, 4  ;;  %s1216_s12 = smov [#allocation2]   ;;  %s15_s11 = int_to_ptr.hbm [resolvable:$true] %s14_s11 }
   0x3   :  { %s16_s13 = sshll.u32 %s1216_s12, 4  ;;  %s27_s16 = sshll.u32 %s1626_s1, 4  ;;  %s17_s13 = int_to_ptr.vmem [resolvable:$true] %s16_s13  ;;  %s28_s16 = int_to_ptr.hbm [resolvable:$true] %s27_s16 }
   0x4   :  { %s1217_s17 = smov 128   ;;  %s1218_s18 = smov 8  }
   0x5   :  { %22 = dma.hbm_to_vmem [thread:$0]  %s15_s11, 256, %s17_s13, [#allocation3], %s1217_s17, %s1217_s17, %s1218_s18  }
   0x6   :  { %s1219_s19 = smov [#allocation5]  }
   0x7   :  { %s29_s20 = sshll.u32 %s1219_s19, 4  ;;  %s30_s20 = int_to_ptr.vmem [resolvable:$true] %s29_s20 }
   0x8   :  { %35 = dma.hbm_to_vmem [thread:$0]  %s28_s16, 256, %s30_s20, [#allocation6], %s1217_s17, %s1217_s17, %s1218_s18  }
   0x9   :  { %1210 = dma.done.wait [#allocation3], 256  }
   0xa   :  { %1211 = vsyncadd [#allocation3], 4294967040 }
   0xb   :  { %1212 = dma.done.wait [#allocation6], 256  }
   0xc   :  { %1213 = vsyncadd [#allocation6], 4294967040  ;;  %v44_v0 = vld [vmem:[#allocation2] sm:$0xff]  ;;  %v50_v1 = vld [vmem:[#allocation2 + $0x8] sm:$0xff]  ;;  %v1220_v40 = vmov 683565275  }
   0xd   :  { %v52_v2 = vld [vmem:[#allocation5] sm:$0xff]  ;;  %v45_v3 = vmul.f32 0.43633232, %v44_v0  ;;  %v51_v4 = vmul.f32 6.2831855, %v50_v1  ;;  %v56_v6 = vld [vmem:[#allocation5 + $0x8] sm:$0xff] }
   0xe   :  { %v53_v5 = vmul.f32 0.43633232, %v52_v2  ;;  %v57_v9 = vmul.f32 6.2831855, %v56_v6  ;;  %v1221_v42 = vmov 2475754826  }
   0xf   :  { %v46_v7 = vadd.f32 0.2617994, %v45_v3  ;;  %v1222_v44 = vmov 2131351028   ;;  %v1223_v46 = vmov 2102212464  }
  0x10   :  { %v1251_v8 = vadd.f32 0.2617994, %v53_v5  ;;  %v1257_v13 = vsub.f32 %v57_v9, %v51_v4  ;;  %v1224_v48 = vmov 920167782   ;;  %v1225_v57 = vmov 1326507024  }
  0x11   :  { %v1253_v10 = vclamps-f32 %v46_v7, 1.5707964  ;;  %s1229_s0 = smov [#allocation7]   ;;  %s1090_s23 = sshll.u32 %s1627_s2, 4  ;;  %s1091_s23 = int_to_ptr.hbm [resolvable:$true] %s1090_s23 }
  0x12   :  { %v367_v11 = vand.u32 2147483647, %v1251_v8  ;;  %v370_v12 = vand.u32 2139095040, %v1251_v8  ;;  %v680_v21 = vand.u32 2139095040, %v1257_v13  ;;  %s1088_s1 = sshll.u32 %s1229_s0, 4  ;;  %s1089_s1 = int_to_ptr.vmem [resolvable:$true] %s1088_s1 }
  0x13   :  { %v58_v14 = vand.u32 2147483647, %v1253_v10  ;;  %v61_v15 = vand.u32 2139095040, %v1253_v10 }
  0x14   :  { %v371_v16 = vshrl.u32 %v370_v12, 23  ;;  %v374_v17 = vand.u32 8388607, %v367_v11  ;;  %v681_v27 = vshrl.u32 %v680_v21, 23 }
  0x15   :  { %v62_v18 = vshrl.u32 %v61_v15, 23  ;;  %v65_v19 = vand.u32 8388607, %v58_v14 }
  0x16   :  { %v1108_v20 = vadd.s32 4294967169, %v371_v16  ;;  %v375_v22 = vor.u32 8388608, %v374_v17  ;;  %v1272_v34 = vadd.s32 4294967169, %v681_v27 }
  0x17   :  { %v1102_v23 = vadd.s32 4294967169, %v62_v18  ;;  %v66_v24 = vor.u32 8388608, %v65_v19 }
  0x18   :  { %v377_v25 = vadd.s32 1, %v1108_v20  ;;  %v1268_v30 = vshll.u32 %v375_v22, 8 }
  0x19   :  { %v68_v26 = vadd.s32 1, %v1102_v23  ;;  %v1266_v28 = vshll.u32 %v66_v24, 8 }
  0x1a   :  { %vm378_vm0 = vcmp.gt.s32.totalorder %v377_v25, 0  ;;  %v1280_v37 = vand.u32 65535, %v1268_v30  ;;  %v1283_v38 = vshrl.u32 %v1268_v30, 16 }
  0x1b   :  { %v379_v29 = vsel %vm378_vm0, %v377_v25, 0  ;;  %vm69_vm1 = vcmp.gt.s32.totalorder %v68_v26, 0  ;;  %v1277_v36 = vand.u32 65535, %v1266_v28  ;;  %v108_v17 = vshrl.u32 %v1266_v28, 16 }
  0x1c   :  { %v70_v31 = vsel %vm69_vm1, %v68_v26, 0  ;;  %v1270_v32 = vand.u32 31, %v379_v29  ;;  %v1290_v50 = vshrl.u32 %v379_v29, 5 }
  0x1d   :  { %v72_v33 = vand.u32 31, %v70_v31  ;;  %v1274_v35 = vshrl.u32 %v70_v31, 5 }
  0x1e   :  { %v1293_v51 = vsub.s32 32, %v1270_v32  ;;  %v384_v55 = vshll.u32 %v1220_v40, %v1270_v32  ;;  %v387_v59 = vshll.u32 %v1221_v42, %v1270_v32  ;;  %v390_v4 = vshll.u32 %v1222_v44, %v1270_v32 }
  0x1f   :  { %v73_v39 = vsub.s32 32, %v72_v33  ;;  %v75_v41 = vshll.u32 %v1220_v40, %v72_v33  ;;  %v78_v43 = vshll.u32 %v1221_v42, %v72_v33  ;;  %v81_v45 = vshll.u32 %v1222_v44, %v72_v33 }
  0x20   :  { %v84_v47 = vshll.u32 %v1223_v46, %v72_v33  ;;  %v87_v49 = vshll.u32 %v1224_v48, %v72_v33  ;;  %vm90_vm2 = vcmp.lt.s32.totalorder %v1274_v35, 1  ;;  %vm93_vm3 = vcmp.lt.s32.totalorder %v1274_v35, 4 }
  0x21   :  { %v76_v52 = vshrl.u32 %v1221_v42, %v73_v39  ;;  %v79_v53 = vshrl.u32 %v1222_v44, %v73_v39  ;;  %v82_v54 = vshrl.u32 %v1223_v46, %v73_v39  ;;  %v85_v56 = vshrl.u32 %v1224_v48, %v73_v39 }
  0x22   :  { %v88_v58 = vshrl.u32 %v1225_v57, %v73_v39  ;;  %v74_v63 = vshrl.u32 %v1220_v40, %v73_v39  ;;  %vm92_vm4 = vcmp.lt.s32.totalorder %v1274_v35, 3  ;;  %vm91_vm5 = vcmp.lt.s32.totalorder %v1274_v35, 2 }
  0x23   :  { %v77_v60 = vor.u32 %v76_v52, %v75_v41  ;;  %v80_v61 = vor.u32 %v79_v53, %v78_v43  ;;  %v83_v62 = vor.u32 %v82_v54, %v81_v45  ;;  %v86_v0 = vor.u32 %v85_v56, %v84_v47 }
  0x24   :  { %v89_v1 = vor.u32 %v88_v58, %v87_v49  ;;  %v385_v7 = vshrl.u32 %v1221_v42, %v1293_v51  ;;  %v388_v9 = vshrl.u32 %v1222_v44, %v1293_v51  ;;  %v391_v21 = vshrl.u32 %v1223_v46, %v1293_v51 }
  0x25   :  { %v98_v2 = vsel %vm90_vm2, %v77_v60, %v80_v61  ;;  %v102_v3 = vsel %vm90_vm2, %v80_v61, %v83_v62  ;;  %v99_v5 = vsel %vm93_vm3, %v86_v0, 920167782  ;;  %v95_v12 = vsel %vm93_vm3, %v83_v62, 2102212464 }
  0x26   :  { %v103_v6 = vsel %vm93_vm3, %v89_v1, 1326507024  ;;  %v100_v15 = vsel %vm92_vm4, %v83_v62, %v99_v5  ;;  %v94_v18 = vsel %vm90_vm2, %v74_v63, %v77_v60  ;;  %vm399_vm6 = vcmp.lt.s32.totalorder %v1290_v50, 1 }
  0x27   :  { %v104_v16 = vsel %vm92_vm4, %v86_v0, %v103_v6  ;;  %v101_v19 = vsel %vm91_vm5, %v98_v2, %v100_v15  ;;  %v96_v26 = vsel %vm92_vm4, %v80_v61, %v95_v12  ;;  %v1335_v27 = vor.u32 %v385_v7, %v384_v55 }
  0x28   :  { %v105_v20 = vsel %vm91_vm5, %v102_v3, %v104_v16  ;;  %v131_v24 = vand.u32 65535, %v101_v19  ;;  %v132_v25 = vshrl.u32 %v101_v19, 16  ;;  %v1337_v29 = vor.u32 %v388_v9, %v387_v59 }
  0x29   :  { %v109_v22 = vand.u32 65535, %v105_v20  ;;  %v110_v23 = vshrl.u32 %v105_v20, 16  ;;  %v1339_v31 = vor.u32 %v391_v21, %v390_v4  ;;  %v393_v43 = vshll.u32 %v1223_v46, %v1270_v32 }
  0x2a   :  { %vm400_vm7 = vcmp.lt.s32.totalorder %v1290_v50, 2  ;;  %v133_v45 = vmul.u32 %v131_v24, %v1277_v36  ;;  %v134_v47 = vmul.u32 %v132_v25, %v1277_v36  ;;  %v135_v49 = vmul.u32 %v131_v24, %v108_v17 }
  0x2b   :  { %v111_v33 = vmul.u32 %v109_v22, %v1277_v36  ;;  %v112_v39 = vmul.u32 %v110_v23, %v1277_v36  ;;  %v113_v41 = vmul.u32 %v109_v22, %v108_v17  ;;  %v394_v52 = vshrl.u32 %v1224_v48, %v1293_v51 }
  0x2c   :  { %v114_v53 = vmul.u32 %v110_v23, %v108_v17  ;;  %v396_v56 = vshll.u32 %v1224_v48, %v1270_v32  ;;  %v136_v59 = vmul.u32 %v132_v25, %v108_v17  ;;  %v137_v60 = vshll.u32 %v134_v47, 16 }
  0x2d   :  { %v115_v54 = vshll.u32 %v112_v39, 16  ;;  %v117_v55 = vshll.u32 %v113_v41, 16  ;;  %v116_v58 = vshrl.u32 %v112_v39, 16  ;;  %v139_v61 = vshll.u32 %v135_v49, 16 }
  0x2e   :  { %v138_v63 = vshrl.u32 %v134_v47, 16  ;;  %v397_v36 = vshrl.u32 %v1225_v57, %v1293_v51  ;;  %v1226_v0 = vmov 0   ;;  %vm141_vm9 = vc.u32 %v133_v45, %v137_v60 }
  0x2f   :  { %vm119_vm8 = vc.u32 %v111_v33, %v115_v54  ;;  %v121_v62 = vadd.s32 %v115_v54, %v111_v33  ;;  %v143_v2 = vadd.s32 %v137_v60, %v133_v45  ;;  %v395_v3 = vor.u32 %v394_v52, %v393_v43 }
  0x30   :  { %v120_v1 = vsel %vm119_vm8, 1, %v1226_v0  ;;  %v142_v32 = vsel %vm141_vm9, 1, %v1226_v0  ;;  %vm401_vm11 = vcmp.lt.s32.totalorder %v1290_v50, 3  ;;  %v398_v7 = vor.u32 %v397_v36, %v396_v56 }
  0x31   :  { %v122_v4 = vadd.s32 %v120_v1, %v114_v53  ;;  %vm123_vm10 = vc.u32 %v121_v62, %v117_v55  ;;  %v144_v6 = vadd.s32 %v142_v32, %v136_v59  ;;  %vm145_vm12 = vc.u32 %v143_v2, %v139_v61 }
  0x32   :  { %v124_v5 = vsel %vm123_vm10, 1, %v1226_v0  ;;  %v118_v9 = vshrl.u32 %v113_v41, 16  ;;  %v146_v15 = vsel %vm145_vm12, 1, %v1226_v0  ;;  %vm402_vm13 = vcmp.lt.s32.totalorder %v1290_v50, 4 }
  0x33   :  { %v126_v12 = vadd.s32 %v124_v5, %v122_v4  ;;  %v140_v16 = vshrl.u32 %v135_v49, 16  ;;  %v148_v17 = vadd.s32 %v146_v15, %v144_v6  ;;  %v407_v19 = vsel %vm399_vm6, %v1335_v27, %v1337_v29 }
  0x34   :  { %v408_v20 = vsel %vm402_vm13, %v395_v3, 920167782  ;;  %v1366_v22 = vadd.s32 %v143_v2, %v139_v61  ;;  %v411_v24 = vsel %vm399_vm6, %v1337_v29, %v1339_v31  ;;  %v97_v25 = vsel %vm91_vm5, %v94_v18, %v96_v26 }
  0x35   :  { %v127_v21 = vadd.s32 %v126_v12, %v116_v58  ;;  %v409_v23 = vsel %vm401_vm11, %v1339_v31, %v408_v20  ;;  %v149_v33 = vadd.s32 %v148_v17, %v138_v63  ;;  %v412_v41 = vsel %vm402_vm13, %v398_v7, 1326507024 }
  0x36   :  { %v410_v39 = vsel %vm400_vm7, %v407_v19, %v409_v23  ;;  %v413_v45 = vsel %vm401_vm11, %v395_v3, %v412_v41  ;;  %v383_v53 = vshrl.u32 %v1220_v40, %v1293_v51  ;;  %v151_v18 = vmul.u32 %v1266_v28, %v97_v25 }
  0x37   :  { %v1381_v43 = vadd.s32 %v127_v21, %v118_v9  ;;  %v440_v47 = vand.u32 65535, %v410_v39  ;;  %v441_v49 = vshrl.u32 %v410_v39, 16  ;;  %v150_v52 = vadd.s32 %v149_v33, %v140_v16 }
  0x38   :  { %v414_v35 = vsel %vm400_vm7, %v411_v24, %v413_v45  ;;  %v687_v59 = vadd.s32 1, %v1272_v34  ;;  %v404_v51 = vsel %vm402_vm13, %v1339_v31, 2102212464  ;;  %v403_v2 = vsel %vm399_vm6, %v383_v53, %v1335_v27 }
  0x39   :  { %vm153_vm14 = vc.u32 %v1381_v43, %v1366_v22  ;;  %v418_v26 = vand.u32 65535, %v414_v35  ;;  %v419_v54 = vshrl.u32 %v414_v35, 16  ;;  %v154_v55 = vadd.s32 1, %v150_v52 }
  0x3a   :  { %v443_v56 = vmul.u32 %v441_v49, %v1280_v37  ;;  %v444_v58 = vmul.u32 %v440_v47, %v1283_v38  ;;  %v442_v63 = vmul.u32 %v440_v47, %v1280_v37  ;;  %v405_v31 = vsel %vm401_vm11, %v1337_v29, %v404_v51 }
  0x3b   :  { %v420_v60 = vmul.u32 %v418_v26, %v1280_v37  ;;  %v421_v28 = vmul.u32 %v419_v54, %v1280_v37  ;;  %v422_v61 = vmul.u32 %v418_v26, %v1283_v38  ;;  %v155_v62 = vsel %vm153_vm14, %v154_v55, %v150_v52 }
  0x3c   :  { %v446_v36 = vshll.u32 %v443_v56, 16  ;;  %v156_v1 = vadd.s32 %v155_v62, %v151_v18  ;;  %v423_v34 = vmul.u32 %v419_v54, %v1283_v38  ;;  %v445_v32 = vmul.u32 %v441_v49, %v1283_v38 }
  0x3d   :  { %v424_v3 = vshll.u32 %v421_v28, 16  ;;  %v426_v4 = vshll.u32 %v422_v61, 16  ;;  %v448_v5 = vshll.u32 %v444_v58, 16  ;;  %vm688_vm0 = vcmp.gt.s32.totalorder %v687_v59, 0 }
  0x3e   :  { %v157_v6 = vadd.s32 536870912, %v156_v1  ;;  %v425_v7 = vshrl.u32 %v421_v28, 16  ;;  %vm450_vm1 = vc.u32 %v442_v63, %v446_v36  ;;  %v452_v27 = vadd.s32 %v446_v36, %v442_v63 }
  0x3f   :  { %vm428_vm15 = vc.u32 %v420_v60, %v424_v3  ;;  %v430_v37 = vadd.s32 %v424_v3, %v420_v60  ;;  %v451_v16 = vsel %vm450_vm1, 1, %v1226_v0  ;;  %v447_v17 = vshrl.u32 %v443_v56, 16 }
  0x40   :  { %v429_v9 = vsel %vm428_vm15, 1, %v1226_v0  ;;  %v1411_v12 = vshrl.u32 %v157_v6, 30  ;;  %v453_v38 = vadd.s32 %v451_v16, %v445_v32  ;;  %vm454_vm3 = vc.u32 %v452_v27, %v448_v5 }
  0x41   :  { %v431_v15 = vadd.s32 %v429_v9, %v423_v34  ;;  %vm432_vm2 = vc.u32 %v430_v37, %v426_v4  ;;  %v427_v20 = vshrl.u32 %v422_v61, 16  ;;  %v455_v23 = vsel %vm454_vm3, 1, %v1226_v0 }
  0x42   :  { %v433_v29 = vsel %vm432_vm2, 1, %v1226_v0  ;;  %v159_v19 = vshll.u32 %v1411_v12, 30  ;;  %v449_v24 = vshrl.u32 %v444_v58, 16  ;;  %v457_v25 = vadd.s32 %v455_v23, %v453_v38 }
  0x43   :  { %v435_v21 = vadd.s32 %v433_v29, %v431_v15  ;;  %v689_v33 = vsel %vm688_vm0, %v687_v59, 0  ;;  %v1420_v45 = vadd.s32 %v452_v27, %v448_v5  ;;  %v406_v47 = vsel %vm400_vm7, %v403_v2, %v405_v31 }
  0x44   :  { %v1418_v39 = vsub.s32 %v156_v1, %v159_v19  ;;  %v458_v49 = vadd.s32 %v457_v25, %v447_v17  ;;  %v691_v53 = vand.u32 31, %v689_v33  ;;  %v460_v26 = vmul.u32 %v1268_v30, %v406_v47 }
  0x45   :  { %v436_v41 = vadd.s32 %v435_v21, %v425_v7  ;;  %v677_v59 = vand.u32 2147483647, %v1257_v13  ;;  %v1435_v51 = vshrl.u32 %v689_v33, 5  ;;  %vm60_vm2 = vcmp.lt.s32.totalorder %v1253_v10, 0 }
  0x46   :  { %v162_v35 = vsub.s32 0, %v1418_v39  ;;  %v459_v18 = vadd.s32 %v458_v49, %v449_v24  ;;  %vm161_vm4 = vcmp.lt.s32.totalorder %v1418_v39, 0  ;;  %v1431_v55 = vsub.s32 32, %v691_v53 }
  0x47   :  { %v1424_v52 = vadd.s32 %v436_v41, %v427_v20  ;;  %v703_v61 = vshll.u32 %v1223_v46, %v691_v53  ;;  %v697_v62 = vshll.u32 %v1221_v42, %v691_v53  ;;  %v700_v36 = vshll.u32 %v1222_v44, %v691_v53 }
  0x48   :  { %v463_v54 = vadd.s32 1, %v459_v18  ;;  %v163_v50 = vsel %vm161_vm4, %v162_v35, %v1418_v39  ;;  %v704_v30 = vshrl.u32 %v1224_v48, %v1431_v55  ;;  %v698_v63 = vshrl.u32 %v1222_v44, %v1431_v55 }
  0x49   :  { %vm462_vm5 = vc.u32 %v1424_v52, %v1420_v45  ;;  %v164_v60 = vclz %v163_v50  ;;  %v701_v1 = vshrl.u32 %v1223_v46, %v1431_v55  ;;  %v684_v2 = vand.u32 8388607, %v677_v59 }
  0x4a   :  { %v464_v56 = vsel %vm462_vm5, %v463_v54, %v459_v18  ;;  %v706_v34 = vshll.u32 %v1224_v48, %v691_v53  ;;  %v707_v3 = vshrl.u32 %v1225_v57, %v1431_v55  ;;  %v694_v4 = vshll.u32 %v1220_v40, %v691_v53 }
  0x4b   :  { %v465_v58 = vadd.s32 %v464_v56, %v460_v26  ;;  %v695_v32 = vshrl.u32 %v1221_v42, %v1431_v55  ;;  %v1103_v5 = vadd.s32 4294967294, %v164_v60  ;;  %v705_v44 = vor.u32 %v704_v30, %v703_v61 }
  0x4c   :  { %v1457_v46 = vor.u32 %v698_v63, %v697_v62  ;;  %v1459_v37 = vor.u32 %v701_v1, %v700_v36  ;;  %vm712_vm6 = vcmp.lt.s32.totalorder %v1435_v51, 4  ;;  %v685_v48 = vor.u32 8388608, %v684_v2 }
  0x4d   :  { %v466_v28 = vadd.s32 536870912, %v465_v58  ;;  %v708_v7 = vor.u32 %v707_v3, %v706_v34  ;;  %vm709_vm7 = vcmp.lt.s32.totalorder %v1435_v51, 1  ;;  %v1465_v9 = vor.u32 %v695_v32, %v694_v4 }
  0x4e   :  { %vm1104_vm8 = vcmp.lt.s32.totalorder %v1103_v5, 0  ;;  %vm711_vm9 = vcmp.lt.s32.totalorder %v1435_v51, 3  ;;  %v718_v42 = vsel %vm712_vm6, %v705_v44, 920167782  ;;  %vm710_vm11 = vcmp.lt.s32.totalorder %v1435_v51, 2 }
  0x4f   :  { %v1451_v31 = vshrl.u32 %v466_v28, 30  ;;  %v721_v15 = vsel %vm709_vm7, %v1457_v46, %v1459_v37  ;;  %v722_v16 = vsel %vm712_vm6, %v708_v7, 1326507024  ;;  %v1479_v29 = vshll.u32 %v685_v48, 8 }
  0x50   :  { %v717_v38 = vsel %vm709_vm7, %v1465_v9, %v1457_v46  ;;  %v719_v19 = vsel %vm711_vm9, %v1459_v37, %v718_v42  ;;  %v723_v20 = vsel %vm711_vm9, %v705_v44, %v722_v16  ;;  %v167_v21 = vsel %vm1104_vm8, 0, %v1103_v5 }
  0x51   :  { %v468_v6 = vshll.u32 %v1451_v31, 30  ;;  %v724_v24 = vsel %vm710_vm11, %v721_v15, %v723_v20  ;;  %v720_v33 = vsel %vm710_vm11, %v717_v38, %v719_v19  ;;  %v726_v41 = vand.u32 65535, %v1479_v29 }
  0x52   :  { %v729_v47 = vshrl.u32 %v724_v24, 16  ;;  %v172_v49 = vsub.s32 4294967266, %v167_v21  ;;  %v727_v53 = vshrl.u32 %v1479_v29, 16  ;;  %v728_v35 = vand.u32 65535, %v724_v24 }
  0x53   :  { %v1463_v57 = vsub.s32 %v465_v58, %v468_v6  ;;  %v751_v26 = vshrl.u32 %v720_v33, 16  ;;  %v152_v54 = vadd.s32 %v1366_v22, %v1381_v43  ;;  %v168_v58 = vsub.s32 32, %v167_v21 }
  0x54   :  { %v731_v56 = vmul.u32 %v729_v47, %v726_v41  ;;  %v173_v60 = vadd.s32 127, %v172_v49  ;;  %v732_v28 = vmul.u32 %v728_v35, %v727_v53  ;;  %v750_v61 = vand.u32 65535, %v720_v33 }
  0x55   :  { %vm470_vm10 = vcmp.lt.s32.totalorder %v1463_v57, 0  ;;  %v471_v27 = vsub.s32 0, %v1463_v57  ;;  %v730_v30 = vmul.u32 %v728_v35, %v726_v41  ;;  %v461_v62 = vadd.s32 %v1420_v45, %v1424_v52 }
  0x56   :  { %v753_v1 = vmul.u32 %v751_v26, %v726_v41  ;;  %v169_v2 = vshll.u32 %v1418_v39, %v167_v21  ;;  %v733_v34 = vmul.u32 %v729_v47, %v727_v53  ;;  %v734_v3 = vshll.u32 %v731_v56, 16 }
  0x57   :  { %v472_v17 = vsel %vm470_vm10, %v471_v27, %v1463_v57  ;;  %v170_v4 = vshrl.u32 %v152_v54, %v168_v58  ;;  %v174_v32 = vshll.u32 %v173_v60, 23  ;;  %v736_v22 = vshll.u32 %v732_v28, 16 }
  0x58   :  { %v473_v23 = vclz %v472_v17  ;;  %v754_v43 = vmul.u32 %v750_v61, %v727_v53  ;;  %vm738_vm13 = vc.u32 %v730_v30, %v734_v3  ;;  %v740_v44 = vadd.s32 %v734_v3, %v730_v30 }
  0x59   :  { %v752_v6 = vmul.u32 %v750_v61, %v726_v41  ;;  %v739_v45 = vsel %vm738_vm13, 1, %v1226_v0  ;;  %v756_v52 = vshll.u32 %v753_v1, 16  ;;  %v755_v27 = vmul.u32 %v751_v26, %v727_v53 }
  0x5a   :  { %v1109_v25 = vadd.s32 4294967294, %v473_v23  ;;  %v741_v42 = vadd.s32 %v739_v45, %v733_v34  ;;  %vm742_vm14 = vc.u32 %v740_v44, %v736_v22  ;;  %v171_v39 = vor.u32 %v170_v4, %v169_v2 }
  0x5b   :  { %v743_v15 = vsel %vm742_vm14, 1, %v1226_v0  ;;  %v758_v16 = vshll.u32 %v754_v43, 16  ;;  %v175_v17 = vor.u32 4788187, %v174_v32  ;;  %v735_v38 = vshrl.u32 %v731_v56, 16 }
  0x5c   :  { %vm1110_vm12 = vcmp.lt.s32.totalorder %v1109_v25, 0  ;;  %v745_v19 = vadd.s32 %v743_v15, %v741_v42  ;;  %vm760_vm15 = vc.u32 %v752_v6, %v756_v52  ;;  %v762_v23 = vadd.s32 %v756_v52, %v752_v6 }
  0x5d   :  { %v476_v18 = vsel %vm1110_vm12, 0, %v1109_v25  ;;  %v761_v21 = vsel %vm760_vm15, 1, %v1226_v0  ;;  %v693_v24 = vshrl.u32 %v1220_v40, %v1431_v55  ;;  %v178_v33 = vcvt.s32.f32 %v171_v39 }
  0x5e   :  { %v481_v50 = vsub.s32 4294967266, %v476_v18  ;;  %v477_v63 = vsub.s32 32, %v476_v18  ;;  %v478_v5 = vshll.u32 %v1463_v57, %v476_v18  ;;  %v763_v25 = vadd.s32 %v761_v21, %v755_v27 }
  0x5f   :  { %v714_v41 = vsel %vm712_vm6, %v1459_v37, 2102212464  ;;  %vm764_vm0 = vc.u32 %v762_v23, %v758_v16  ;;  %v176_v47 = vand.u32 2147483647, %v175_v17  ;;  %v737_v49 = vshrl.u32 %v732_v28, 16 }
  0x60   :  { %v482_v36 = vadd.s32 127, %v481_v50  ;;  %v479_v48 = vshrl.u32 %v461_v62, %v477_v63  ;;  %v746_v53 = vadd.s32 %v745_v19, %v735_v38  ;;  %v765_v35 = vsel %vm764_vm0, 1, %v1226_v0 }
  0x61   :  { %v757_v54 = vshrl.u32 %v753_v1, 16  ;;  %v713_v50 = vsel %vm709_vm7, %v693_v24, %v1465_v9  ;;  %v715_v40 = vsel %vm711_vm9, %v1457_v46, %v714_v41  ;;  %v767_v55 = vadd.s32 %v765_v35, %v763_v25 }
  0x62   :  { %v483_v7 = vshll.u32 %v482_v36, 23  ;;  %v480_v57 = vor.u32 %v479_v48, %v478_v5  ;;  %v759_v56 = vshrl.u32 %v754_v43, 16  ;;  %v179_v37 = vmul.f32 %v178_v33, %v176_v47 }
  0x63   :  { %v747_v58 = vadd.s32 %v746_v53, %v737_v49  ;;  %v766_v60 = vadd.s32 %v762_v23, %v758_v16  ;;  %v716_v0 = vsel %vm710_vm11, %v713_v50, %v715_v40  ;;  %v768_v61 = vadd.s32 %v767_v55, %v757_v54 }
  0x64   :  { %v484_v20 = vor.u32 4788187, %v483_v7  ;;  %v487_v26 = vcvt.s32.f32 %v480_v57  ;;  %v180_v62 = vxor.u32 2147483648, %v179_v37  ;;  %v770_v63 = vmul.u32 %v1479_v29, %v716_v0 }
  0x65   :  { %v769_v30 = vadd.s32 %v768_v61, %v759_v56  ;;  %vm772_vm1 = vc.u32 %v747_v58, %v766_v60  ;;  %vm369_vm3 = vcmp.lt.s32.totalorder %v1251_v8, 0  ;;  %vm1525_vm4 = vcmp.le.f32.partialorder %v58_v14, 0.7853982 }
  0x66   :  { %v485_v18 = vand.u32 2147483647, %v484_v20  ;;  %v181_v51 = vsel %vm60_vm2, %v180_v62, %v179_v37  ;;  %vm1533_vm5 = vcmp.le.f32.partialorder %v367_v11, 0.7853982  ;;  %v182_v45 = vsub.s32 4, %v1411_v12 }
  0x67   :  { %v773_v36 = vadd.s32 1, %v769_v30  ;;  %v1542_v14 = vsel %vm1525_vm4, %v1253_v10, %v181_v51  ;;  %v771_v38 = vadd.s32 %v766_v60, %v747_v58  ;;  %vm679_vm8 = vcmp.lt.s32.totalorder %v1257_v13, 0 }
  0x68   :  { %v488_v28 = vmul.f32 %v487_v26, %v485_v18  ;;  %v186_v11 = vmul.f32 %v1542_v14, %v1542_v14  ;;  %v183_v17 = vsel %vm60_vm2, %v182_v45, %v1411_v12  ;;  %v491_v18 = vsub.s32 4, %v1451_v31 }
  0x69   :  { %v774_v46 = vsel %vm772_vm1, %v773_v36, %v769_v30  ;;  %v185_v49 = vsel %vm1525_vm4, 0, %v183_v17  ;;  %vm1572_vm9 = vcmp.le.f32.partialorder %v677_v59, 0.7853982 }
  0x6a   :  { %v489_v9 = vxor.u32 2147483648, %v488_v28  ;;  %v775_v2 = vadd.s32 %v774_v46, %v770_v63  ;;  %v194_v44 = vmul.f32 -0.00019511016, %v186_v11  ;;  %v187_v42 = vmul.f32 -0.001358992, %v186_v11 }
  0x6b   :  { %v202_v40 = vadd.s32 3, %v185_v49  ;;  %v492_v60 = vsel %vm369_vm3, %v491_v18, %v1451_v31 }
  0x6c   :  { %v490_v34 = vsel %vm369_vm3, %v489_v9, %v488_v28  ;;  %v776_v3 = vadd.s32 536870912, %v775_v2  ;;  %v195_v27 = vadd.f32 0.008332121, %v194_v44  ;;  %v188_v19 = vadd.f32 0.041655596, %v187_v42 }
  0x6d   :  { %v1547_v4 = vsel %vm1533_vm5, %v1251_v8, %v490_v34  ;;  %v203_v30 = vand.u32 3, %v202_v40  ;;  %v494_v62 = vsel %vm1533_vm5, 0, %v492_v60  ;;  %v357_v34 = vand.u32 3, %v185_v49 }
  0x6e   :  { %v1549_v32 = vshrl.u32 %v776_v3, 30  ;;  %v495_v43 = vmul.f32 %v1547_v4, %v1547_v4  ;;  %v196_v57 = vmul.f32 %v195_v27, %v186_v11  ;;  %v189_v53 = vmul.f32 %v188_v19, %v186_v11 }
  0x6f   :  { %v511_v3 = vadd.s32 3, %v494_v62  ;;  %v666_v29 = vand.u32 3, %v494_v62  ;;  %vm204_vm10 = vcmp.lt.s32.totalorder %v203_v30, 2  ;;  %vm205_vm11 = vcmp.eq.s32.totalorder %v203_v30, 0 }
  0x70   :  { %v778_v22 = vshll.u32 %v1549_v32, 30  ;;  %v503_v48 = vmul.f32 -0.00019511016, %v495_v43  ;;  %v496_v39 = vmul.f32 -0.001358992, %v495_v43  ;;  %v801_v46 = vsub.s32 4, %v1549_v32 }
  0x71   :  { %v197_v35 = vadd.f32 -0.16666654, %v196_v57  ;;  %v190_v37 = vadd.f32 -0.4999988, %v189_v53  ;;  %vm208_vm12 = vcmp.eq.s32.totalorder %v203_v30, 2  ;;  %vm359_vm13 = vcmp.eq.s32.totalorder %v357_v34, 0 }
  0x72   :  { %v779_v5 = vsub.s32 %v775_v2, %v778_v22  ;;  %v504_v15 = vadd.f32 0.008332121, %v503_v48  ;;  %v497_v20 = vadd.f32 0.041655596, %v496_v39  ;;  %v802_v44 = vsel %vm679_vm8, %v801_v46, %v1549_v32 }
  0x73   :  { %v198_v58 = vmul.f32 %v197_v35, %v186_v11  ;;  %v191_v9 = vmul.f32 %v190_v37, %v186_v11  ;;  %vm362_vm14 = vcmp.eq.s32.totalorder %v357_v34, 2  ;;  %v804_v45 = vsel %vm1572_vm9, 0, %v802_v44 }
  0x74   :  { %vm780_vm6 = vcmp.lt.s32.totalorder %v779_v5, 0  ;;  %v781_v6 = vsub.s32 0, %v779_v5  ;;  %v505_v23 = vmul.f32 %v504_v15, %v495_v43  ;;  %v498_v12 = vmul.f32 %v497_v20, %v495_v43 }
  0x75   :  { %v199_v36 = vadd.f32 1.0, %v198_v58  ;;  %vm358_vm15 = vcmp.lt.s32.totalorder %v357_v34, 2  ;;  %vm668_vm0 = vcmp.eq.s32.totalorder %v666_v29, 0  ;;  %vm671_vm3 = vcmp.eq.s32.totalorder %v666_v29, 2 }
  0x76   :  { %v782_v7 = vsel %vm780_vm6, %v781_v6, %v779_v5  ;;  %v506_v26 = vadd.f32 -0.16666654, %v505_v23  ;;  %v499_v28 = vadd.f32 -0.4999988, %v498_v12  ;;  %vm667_vm5 = vcmp.lt.s32.totalorder %v666_v29, 2 }
  0x77   :  { %v783_v52 = vclz %v782_v7  ;;  %v200_v11 = vmul.f32 %v199_v36, %v1542_v14  ;;  %v512_v7 = vand.u32 3, %v511_v3  ;;  %v821_v49 = vand.u32 3, %v804_v45 }
  0x78   :  { %v507_v0 = vmul.f32 %v506_v26, %v495_v43  ;;  %v500_v1 = vmul.f32 %v499_v28, %v495_v43  ;;  %vm201_vm6 = vweird.f32 %v1253_v10 }
  0x79   :  { %v1115_v16 = vadd.s32 4294967294, %v783_v52  ;;  %v206_v32 = vxor.u32 2147483648, %v200_v11  ;;  %vm513_vm1 = vcmp.lt.s32.totalorder %v512_v7, 2  ;;  %vm514_vm2 = vcmp.eq.s32.totalorder %v512_v7, 0 }
  0x7a   :  { %v508_v51 = vadd.f32 1.0, %v507_v0  ;;  %v501_v6 = vadd.f32 1.0, %v500_v1  ;;  %vm517_vm4 = vcmp.eq.s32.totalorder %v512_v7, 2 }
  0x7b   :  { %vm1116_vm7 = vcmp.lt.s32.totalorder %v1115_v16, 0 }
  0x7c   :  { %v786_v21 = vsel %vm1116_vm7, 0, %v1115_v16  ;;  %v509_v59 = vmul.f32 %v508_v51, %v1547_v4  ;;  %v518_v39 = vxor.u32 2147483648, %v501_v6  ;;  %v975_v4 = vadd.s32 3, %v804_v45 }
  0x7d   :  { %v787_v24 = vsub.s32 32, %v786_v21  ;;  %v788_v25 = vshll.u32 %v779_v5, %v786_v21  ;;  %v791_v33 = vsub.s32 4294967266, %v786_v21  ;;  %v192_v5 = vadd.f32 1.0, %v191_v9 }
  0x7e   :  { %v515_v27 = vxor.u32 2147483648, %v509_v59  ;;  %v976_v53 = vand.u32 3, %v975_v4  ;;  %vm510_vm7 = vweird.f32 %v1251_v8 }
  0x7f   :  { %v789_v41 = vshrl.u32 %v771_v38, %v787_v24  ;;  %v792_v47 = vadd.s32 127, %v791_v33  ;;  %v209_v42 = vxor.u32 2147483648, %v192_v5  ;;  %v207_v19 = vsel %vm205_vm11, %v192_v5, %v206_v32 }
  0x80   :  { %v361_v20 = vsel %vm359_vm13, %v192_v5, %v206_v32  ;;  %v670_v23 = vsel %vm668_vm0, %v501_v6, %v515_v27  ;;  %v673_v24 = vsel %vm671_vm3, %v518_v39, %v509_v59  ;;  %vm823_vm11 = vcmp.eq.s32.totalorder %v821_v49, 0 }
  0x81   :  { %v790_v54 = vor.u32 %v789_v41, %v788_v25  ;;  %v793_v50 = vshll.u32 %v792_v47, 23  ;;  %v210_v57 = vsel %vm208_vm12, %v209_v42, %v200_v11  ;;  %v364_v21 = vsel %vm362_vm14, %v209_v42, %v200_v11 }
  0x82   :  { %v516_v41 = vsel %vm514_vm2, %v501_v6, %v515_v27  ;;  %v519_v47 = vsel %vm517_vm4, %v518_v39, %v509_v59  ;;  %v211_v35 = vsel %vm204_vm10, %v207_v19, %v210_v57  ;;  %v365_v26 = vsel %vm358_vm15, %v361_v20, %v364_v21 }
  0x83   :  { %v794_v55 = vor.u32 4788187, %v793_v50  ;;  %v797_v56 = vcvt.s32.f32 %v790_v54  ;;  %v674_v54 = vsel %vm667_vm5, %v670_v23, %v673_v24  ;;  %v520_v50 = vsel %vm513_vm1, %v516_v41, %v519_v47 }
  0x84   :  { %v366_v37 = vsel %vm201_vm6, nan, %v365_v26  ;;  %v675_v58 = vsel %vm510_vm7, nan, %v674_v54  ;;  %v521_v28 = vsel %vm510_vm7, nan, %v520_v50  ;;  %vm822_vm10 = vcmp.lt.s32.totalorder %v821_v49, 2 }
  0x85   :  { %v795_v61 = vand.u32 2147483647, %v794_v55  ;;  %vm978_vm12 = vcmp.eq.s32.totalorder %v976_v53, 0  ;;  %vm977_vm13 = vcmp.lt.s32.totalorder %v976_v53, 2  ;;  %vm820_vm14 = vweird.f32 %v1257_v13 }
  0x86   :  { %v988_v46 = vmul.f32 %v521_v28, %v366_v37  ;;  %v1007_v44 = vmul.f32 %v675_v58, %v366_v37 }
  0x87   :  { %v798_v63 = vmul.f32 %v797_v56, %v795_v61  ;;  %v212_v56 = vsel %vm201_vm6, nan, %v211_v35 }
  0x88   :  { %v989_v30 = vmul.f32 %v675_v58, %v212_v56  ;;  %v1006_v6 = vmul.f32 %v521_v28, %v212_v56 }
  0x89   :  { %v799_v2 = vxor.u32 2147483648, %v798_v63 }
  0x8b   :  { %v800_v22 = vsel %vm679_vm8, %v799_v2, %v798_v63  ;;  %vm826_vm8 = vcmp.eq.s32.totalorder %v821_v49, 2 }
  0x8c   :  { %v803_v43 = vsel %vm1572_vm9, %v1257_v13, %v800_v22  ;;  %vm981_vm9 = vcmp.eq.s32.totalorder %v976_v53, 2 }
  0x8d   :  { %v805_v48 = vmul.f32 %v803_v43, %v803_v43 }
  0x8f   :  { %v806_v14 = vmul.f32 -0.001358992, %v805_v48  ;;  %v813_v52 = vmul.f32 -0.00019511016, %v805_v48 }
  0x91   :  { %v807_v15 = vadd.f32 0.041655596, %v806_v14  ;;  %v814_v16 = vadd.f32 0.008332121, %v813_v52 }
  0x93   :  { %v808_v17 = vmul.f32 %v807_v15, %v805_v48  ;;  %v815_v38 = vmul.f32 %v814_v16, %v805_v48 }
  0x95   :  { %v809_v25 = vadd.f32 -0.4999988, %v808_v17  ;;  %v816_v33 = vadd.f32 -0.16666654, %v815_v38 }
  0x97   :  { %v810_v18 = vmul.f32 %v809_v25, %v805_v48  ;;  %v817_v12 = vmul.f32 %v816_v33, %v805_v48 }
  0x99   :  { %v811_v40 = vadd.f32 1.0, %v810_v18  ;;  %v818_v55 = vadd.f32 1.0, %v817_v12 }
  0x9b   :  { %v819_v10 = vmul.f32 %v818_v55, %v803_v43  ;;  %v827_v60 = vxor.u32 2147483648, %v811_v40 }
  0x9d   :  { %v824_v0 = vxor.u32 2147483648, %v819_v10  ;;  %v828_v61 = vsel %vm826_vm8, %v827_v60, %v819_v10  ;;  %v983_v8 = vsel %vm981_vm9, %v827_v60, %v819_v10 }
  0x9f   :  { %v825_v62 = vsel %vm823_vm11, %v811_v40, %v824_v0  ;;  %v980_v63 = vsel %vm978_vm12, %v811_v40, %v824_v0  ;;  %v1070_v0 = vlaneseq }
  0xa0   :  { %v829_v9 = vsel %vm822_vm10, %v825_v62, %v828_v61  ;;  %v984_v36 = vsel %vm977_vm13, %v980_v63, %v983_v8 }
  0xa1   :  { %v830_v1 = vsel %vm820_vm14, nan, %v829_v9  ;;  %v985_v51 = vsel %vm820_vm14, nan, %v984_v36  ;;  %v1073_v9 = vand.u32 127, %v1070_v0 }
  0xa2   :  { %v986_v31 = vmul.f32 %v985_v51, %v675_v58  ;;  %v990_v2 = vmul.f32 %v989_v30, %v830_v1  ;;  %v1008_v59 = vmul.f32 %v1007_v44, %v830_v1  ;;  %v1071_v30 = vshrl.u32 %v1070_v0, 7 }
  0xa3   :  { %v1227_v1 = vmov 0.0  }
  0xa4   :  { %v987_v34 = vmul.f32 %v986_v31, %v986_v31  ;;  %v991_v3 = vsub.f32 %v988_v46, %v990_v2  ;;  %v1596_v45 = vadd.f32 %v1008_v59, %v1006_v6  ;;  %v1077_v36 = vmul.u32 128, %v1071_v30 }
  0xa5   :  { %v1228_v2 = vmov 0.7853982  }
  0xa6   :  { %v992_v29 = vmul.f32 %v991_v3, %v991_v3  ;;  %v1010_v42 = vand.u32 2147483647, %v1596_v45  ;;  %vm1057_vm5 = vcmp.ne.f32.partialorder %v1596_v45, %v1596_v45  ;;  %vm1053_vm12 = vcmp.lt.s32.totalorder %v1596_v45, 0 }
  0xa7   :  { %vm1050_vm13 = vcmp.lt.f32.partialorder %v1596_v45, 0.0  ;;  %v1054_v51 = vsel %vm1053_vm12, 3.1415927, %v1227_v1 }
  0xa8   :  { %v993_v22 = vadd.f32 %v992_v29, %v987_v34  ;;  %vm1063_vm8 = vcmp.eq.s32.totalorder %v1010_v42, inf  ;;  %v1062_v34 = vsel %vm1050_vm13, 2.3561945, %v1228_v2  ;;  %v1078_v29 = vadd.s32 %v1077_v36, %v1073_v9 }
  0xaa   :  { %1134 = vrsqrt.f32 %v993_v22  ;;  %vm1001_vm15 = vcmp.eq.f32.partialorder %v993_v22, inf  ;;  %v1004_v14 = vand.u32 2147483648, %v993_v22  ;;  %vm1003_vm0 = vcmp.eq.f32.partialorder %v993_v22, 0.0 }
  0xb0   :  { %v1135_v5 = vpop.eup %1134 }
  0xb1   :  { %v995_v11 = vmul.f32 %v1135_v5, %v993_v22 }
  0xb3   :  { %v996_v43 = vmul.f32 %v1135_v5, %v995_v11 }
  0xb5   :  { %v997_v13 = vmul.f32 0.5, %v996_v43 }
  0xb7   :  { %v998_v48 = vsub.f32 1.5, %v997_v13 }
  0xb9   :  { %v999_v7 = vmul.f32 %v1135_v5, %v998_v48 }
  0xbb   :  { %v1000_v52 = vmul.f32 %v999_v7, %v993_v22 }
  0xbd   :  { %v1002_v32 = vsel %vm1001_vm15, %v993_v22, %v1000_v52  ;;  %vm1079_vm15 = vcmp.lt.s32.totalorder %v1078_v29, 8 }
  0xbe   :  { %v1599_v27 = vsel %vm1003_vm0, %v1004_v14, %v1002_v32 }
  0xbf   :  { %v1011_v39 = vand.u32 2147483647, %v1599_v27  ;;  %vm1058_vm6 = vcmp.ne.f32.partialorder %v1599_v27, %v1599_v27  ;;  %vm1055_vm14 = vcmp.eq.f32.partialorder %v1599_v27, 0.0  ;;  %v1068_v5 = vand.u32 2147483648, %v1599_v27 }
  0xc0   :  { %vm1606_vm7 = vmor %vm1057_vm5, %vm1058_vm6 }
  0xc1   :  { %v1013_v15 = vmax.f32 %v1010_v42, %v1011_v39  ;;  %v1012_v21 = vmin.f32 %v1010_v42, %v1011_v39  ;;  %vm1064_vm9 = vcmp.eq.s32.totalorder %v1011_v39, inf  ;;  %vm1047_vm11 = vcmp.gt.f32.partialorder %v1011_v39, %v1010_v42 }
  0xc2   :  { %vm1610_vm10 = vmand %vm1063_vm8, %vm1064_vm9 }
  0xc3   :  { %1136 = vrcp.f32 %v1013_v15  ;;  %v1025_v17 = vand.u32 2147483648, %v1013_v15  ;;  %vm1019_vm1 = vweird.f32 %v1013_v15  ;;  %v1023_v19 = vand.u32 2147483647, %v1013_v15 }
  0xc5   :  { %v1026_v20 = vor.u32 1.1754944e-38, %v1025_v17  ;;  %vm1024_vm4 = vcmp.eq.f32.partialorder %v1023_v19, 8.507059e+37 }
  0xc9   :  { %v1137_v16 = vpop.eup %1136 }
  0xca   :  { %v1015_v4 = vmul.f32 %v1137_v16, %v1013_v15  ;;  %vm1020_vm2 = vweird.f32 %v1137_v16 }
  0xcb   :  { %vm1021_vm3 = vmor %vm1019_vm1, %vm1020_vm2 }
  0xcc   :  { %v1016_v38 = vsub.f32 1.0, %v1015_v4 }
  0xce   :  { %v1017_v57 = vmul.f32 %v1137_v16, %v1016_v38 }
  0xd0   :  { %v1018_v23 = vadd.f32 %v1137_v16, %v1017_v57 }
  0xd2   :  { %v1022_v24 = vsel %vm1021_vm3, %v1137_v16, %v1018_v23 }
  0xd3   :  { %v1027_v25 = vsel %vm1024_vm4, %v1026_v20, %v1022_v24 }
  0xd4   :  { %v1028_v33 = vmul.f32 %v1027_v25, %v1012_v21 }
  0xd6   :  { %v1029_v41 = vmul.f32 %v1028_v33, %v1028_v33 }
  0xd8   :  { %v1030_v47 = vmul.f32 0.002785687, %v1029_v41 }
  0xda   :  { %v1031_v49 = vadd.f32 -0.015866, %v1030_v47 }
  0xdc   :  { %v1032_v53 = vmul.f32 %v1031_v49, %v1029_v41 }
  0xde   :  { %v1033_v35 = vadd.f32 0.04247222, %v1032_v53 }
  0xe0   :  { %v1034_v18 = vmul.f32 %v1033_v35, %v1029_v41 }
  0xe2   :  { %v1035_v54 = vadd.f32 -0.074975304, %v1034_v18 }
  0xe4   :  { %v1036_v50 = vmul.f32 %v1035_v54, %v1029_v41 }
  0xe6   :  { %v1037_v40 = vadd.f32 0.1064488, %v1036_v50 }
  0xe8   :  { %v1038_v55 = vmul.f32 %v1037_v40, %v1029_v41 }
  0xea   :  { %v1039_v56 = vadd.f32 -0.14207031, %v1038_v55 }
  0xec   :  { %v1040_v37 = vmul.f32 %v1039_v56, %v1029_v41 }
  0xee   :  { %v1041_v58 = vadd.f32 0.19993454, %v1040_v37 }
  0xf0   :  { %v1042_v10 = vmul.f32 %v1041_v58, %v1029_v41 }
  0xf2   :  { %v1043_v60 = vadd.f32 -0.33333147, %v1042_v10 }
  0xf4   :  { %v1044_v28 = vmul.f32 %v1043_v60, %v1029_v41 }
  0xf6   :  { %v1045_v61 = vmul.f32 %v1044_v28, %v1028_v33 }
  0xf8   :  { %v1046_v8 = vadd.f32 %v1045_v61, %v1028_v33 }
  0xfa   :  { %v1048_v62 = vsub.f32 1.5707964, %v1046_v8 }
  0xfc   :  { %v1049_v63 = vsel %vm1047_vm11, %v1048_v62, %v1046_v8 }
  0xfd   :  { %v1051_v46 = vsub.f32 3.1415927, %v1049_v63 }
  0xff   :  { %v1052_v31 = vsel %vm1050_vm13, %v1051_v46, %v1049_v63 }
 0x100   :  { %v1056_v3 = vsel %vm1055_vm14, %v1054_v51, %v1052_v31 }
 0x101   :  { %v1060_v22 = vsel %vm1606_vm7, nan, %v1056_v3 }
 0x102   :  { %v1066_v11 = vsel %vm1610_vm10, %v1062_v34, %v1060_v22 }
 0x103   :  { %v1067_v44 = vand.u32 2147483647, %v1066_v11 }
 0x105   :  { %v1069_v43 = vor.u32 %v1068_v5, %v1067_v44 }
 0x107   :  { %v1080_v13 = vsel %vm1079_vm15, %v1069_v43, 0.0 }
 0x108   :  { %1082 = vst [vmem:[#allocation7] sm:$0xff] %v1080_v13 }
 0x109   :  { %1093 = dma.vmem_to_hbm [thread:$0]  %s1089_s1, 128, %s1091_s23, [#allocation4]  }
 0x10a   :  { %1214 = dma.done.wait [#allocation4], 128  }
 0x10b   :  { %1215 = vsyncadd [#allocation4], 4294967168 }
 0x10c   :  { %1098 = vsyncpa [#allocation3], 1 }
 0x10d   :  { %1099 = vsyncpa [#allocation6], 1 }
 0x10e   :  { %1100 = vsyncpa [#allocation4], 1 }

</bundles_post_ra>
